<compile_context>
chip_gen: v7x
topology: tpu7x:2x2x1
jax: 0.10.0
libtpu: 0.0.40
codegen_flags: <defaults>
</compile_context>

<pallas_src>
import functools

import jax
import jax.numpy as jnp
from jax import lax
from jax.experimental import pallas as pl
from jax.experimental.pallas import tpu as pltpu


def _round_up(x, mult):
    return (x + mult - 1) // mult * mult


def _cdiv(a, b):
    return -(-a // b)


def _adain_kernel(x_ref, p_ref, o_ref, *, eps):
    # x_ref: (tile_n, m) row-block; p_ref: (tile_n, 2) packed [weight, bias].
    x = x_ref[...].astype(jnp.float32)
    inv_m = jnp.float32(1.0 / x.shape[-1])

    # Per-row mean and biased (training=True) variance, centered for stability.
    mean = jnp.sum(x, axis=-1, keepdims=True) * inv_m
    xc = x - mean
    var = jnp.sum(xc * xc, axis=-1, keepdims=True) * inv_m

    # Fuse affine into per-row scalars: out = x * s + t.
    p = p_ref[...].astype(jnp.float32)
    s = lax.rsqrt(var + eps) * p[:, 0:1]   # weight * rsqrt(var + eps)
    t = p[:, 1:2] - mean * s               # bias - mean * s

    o_ref[...] = (x * s + t).astype(o_ref.dtype)


def adaptive_instance_norm_1d(x, weight, bias, *, eps=1e-5):
    """x: (b, c, m); weight, bias: (b*c,). Returns (b, c, m)."""
    b, c, m = x.shape
    n = b * c

    dt_bytes = jnp.dtype(x.dtype).itemsize
    # Sublane alignment for the input dtype (8 rows for 4B, 16 for 2B, ...).
    row_align = 8 if dt_bytes >= 4 else (16 if dt_bytes == 2 else 32)

    # ---- Per-generation VMEM budget -> rows per grid step -----------------
    try:
        info = pltpu.get_tpu_info()
        vmem_cap = int(getattr(info, "vmem_capacity_bytes", 64 * 1024 * 1024))
    except Exception:
        vmem_cap = 64 * 1024 * 1024  # conservative (v7x has 64 MiB / core)
    vmem_cap = max(vmem_cap, 32 * 1024 * 1024)
    # ~75% of physical, capped: v5e/v6e -> 96 MiB, v7x -> 48 MiB.
    vmem_limit = min((vmem_cap * 3) // 4, 100 * 1024 * 1024)
    budget = int(vmem_limit * 0.85)  # headroom for compiler-internal scratch

    # Bytes per row per grid step: double-buffered in/out blocks plus f32
    # temporaries (x, xc, result); lanes are padded to 128 in VMEM.
    m_lanes = _round_up(m, 128)
    per_row = m_lanes * (2 * dt_bytes + 2 * dt_bytes + 3 * 4) + 64
    tile_cap = max(row_align, (budget // per_row) // row_align * row_align)

    # Grid: enough steps to fit the budget, and >= 2 when there are enough
    # rows so both v7x TensorCores get work.
    n_ceil = _round_up(n, row_align)
    g = _cdiv(n_ceil, tile_cap)
    if n_ceil >= 2 * row_align:
        g = max(g, 2)
    tile_n = _round_up(_cdiv(n_ceil, g), row_align)
    grid = (_cdiv(n, tile_n),)   # ragged final row-block handled by Pallas

    # ---- Inputs (no HBM padding copies) ------------------------------------
    x2d = x.reshape(n, m)
    params = jnp.stack(
        [weight.reshape(n).astype(jnp.float32),
         bias.reshape(n).astype(jnp.float32)],
        axis=1,
    )  # (n, 2): one small DMA per grid step

    out2d = pl.pallas_call(
        functools.partial(_adain_kernel, eps=float(eps)),
        out_shape=jax.ShapeDtypeStruct((n, m), x.dtype),
        grid_spec=pltpu.PrefetchScalarGridSpec(
            num_scalar_prefetch=0,
            grid=grid,
            in_specs=[
                pl.BlockSpec((tile_n, m), lambda i: (i, 0)),
                pl.BlockSpec((tile_n, 2), lambda i: (i, 0)),
            ],
            out_specs=pl.BlockSpec((tile_n, m), lambda i: (i, 0)),
        ),
        compiler_params=pltpu.CompilerParams(
            dimension_semantics=("parallel",),
            vmem_limit_bytes=int(vmem_limit),
        ),
    )(x2d, params)

    return out2d.reshape(b, c, m)


def _reference(x, weight, bias, eps=1e-5):
    b, c, m = x.shape
    xf = x.reshape(b * c, m).astype(jnp.float32)
    mean = jnp.mean(xf, axis=-1, keepdims=True)
    var = jnp.mean((xf - mean) ** 2, axis=-1, keepdims=True)
    out = (xf - mean) / jnp.sqrt(var + eps)
    out = out * weight.reshape(-1, 1) + bias.reshape(-1, 1)
    return out.reshape(b, c, m).astype(x.dtype)


if __name__ == "__main__":
    key = jax.random.PRNGKey(0)

    # Case 1: shapes consistent with the module forward: (b, c, m).
    b, c, m = 2, 4, 16
    kx, kw, kb, key = jax.random.split(key, 4)
    x = jax.random.normal(kx, (b, c, m), dtype=jnp.float32)
    # weight/bias must be assigned before calling AdaIN; shape (b*c,)
    weight = jax.random.normal(kw, (b * c,), dtype=jnp.float32) * 0.5 + 1.0
    bias = jax.random.normal(kb, (b * c,), dtype=jnp.float32) * 0.1

    out = adaptive_instance_norm_1d(x, weight, bias, eps=1e-5)
    out = jax.block_until_ready(out)
    ref = _reference(x, weight, bias, eps=1e-5)
    assert out.shape == (b, c, m)
    assert jnp.allclose(out, ref, atol=1e-4, rtol=1e-5), "mismatch vs reference (case 1)"

    # Case 2: odd shapes exercising ragged row-blocks + non-128 m (n=15, m=200).
    b2, c2, m2 = 3, 5, 200
    kx2, kw2, kb2, key = jax.random.split(key, 4)
    x2 = jax.random.normal(kx2, (b2, c2, m2), dtype=jnp.float32)
    w2 = jax.random.normal(kw2, (b2 * c2,), dtype=jnp.float32) * 0.5 + 1.0
    bias2 = jax.random.normal(kb2, (b2 * c2,), dtype=jnp.float32) * 0.1

    out2 = adaptive_instance_norm_1d(x2, w2, bias2, eps=1e-5)
    out2 = jax.block_until_ready(out2)
    ref2 = _reference(x2, w2, bias2, eps=1e-5)
    assert out2.shape == (b2, c2, m2)
    assert jnp.allclose(out2, ref2, atol=1e-4, rtol=1e-5), "mismatch vs reference (case 2)"

    print("KERNEL_OK")
</pallas_src>

<mosaic_0001>
module attributes {stable_mosaic.version = 11 : i64} {
  func.func @_adain_kernel(%arg0: i32, %arg1: memref<8x16xf32, #tpu.memory_space<vmem>>, %arg2: memref<8x2xf32, #tpu.memory_space<vmem>>, %arg3: memref<8x16xf32, #tpu.memory_space<vmem>>) attributes {dimension_semantics = [#tpu.dimension_semantics<parallel>], iteration_bounds = array<i64: 1>, scalar_prefetch = 0 : i64, scratch_operands = 0 : i64, tpu.core_type = #tpu.core_type<tc>, window_params = [{transform_indices = @transform_0, window_bounds = array<i64: 8, 16>}, {transform_indices = @transform_1, window_bounds = array<i64: 8, 2>}, {transform_indices = @transform_2, window_bounds = array<i64: 8, 16>}]} {
    %c0 = arith.constant 0 : index
    %c0_0 = arith.constant 0 : index
    %0 = vector.load %arg1[%c0, %c0_0] : memref<8x16xf32, #tpu.memory_space<vmem>>, vector<8x16xf32>
    %cst = arith.constant dense<0.000000e+00> : vector<8xf32>
    %1 = vector.multi_reduction <add>, %0, %cst [1] : vector<8x16xf32> to vector<8xf32>
    %2 = vector.shape_cast %1 : vector<8xf32> to vector<8x1xf32>
    %cst_1 = arith.constant 6.250000e-02 : f32
    %3 = vector.broadcast %cst_1 : f32 to vector<8x1xf32>
    %4 = arith.mulf %2, %3 : vector<8x1xf32>
    %5 = vector.broadcast %4 : vector<8x1xf32> to vector<8x16xf32>
    %6 = arith.subf %0, %5 : vector<8x16xf32>
    %7 = arith.mulf %6, %6 : vector<8x16xf32>
    %cst_2 = arith.constant dense<0.000000e+00> : vector<8xf32>
    %8 = vector.multi_reduction <add>, %7, %cst_2 [1] : vector<8x16xf32> to vector<8xf32>
    %9 = vector.shape_cast %8 : vector<8xf32> to vector<8x1xf32>
    %cst_3 = arith.constant 6.250000e-02 : f32
    %10 = vector.broadcast %cst_3 : f32 to vector<8x1xf32>
    %11 = arith.mulf %9, %10 : vector<8x1xf32>
    %c0_4 = arith.constant 0 : index
    %c0_5 = arith.constant 0 : index
    %12 = vector.load %arg2[%c0_4, %c0_5] : memref<8x2xf32, #tpu.memory_space<vmem>>, vector<8x2xf32>
    %cst_6 = arith.constant 9.99999974E-6 : f32
    %13 = vector.broadcast %cst_6 : f32 to vector<8x1xf32>
    %14 = arith.addf %11, %13 : vector<8x1xf32>
    %15 = math.rsqrt %14 : vector<8x1xf32>
    %16 = vector.extract_strided_slice %12 {offsets = [0, 0], sizes = [8, 1], strides = [1, 1]} : vector<8x2xf32> to vector<8x1xf32>
    %17 = arith.mulf %15, %16 : vector<8x1xf32>
    %18 = vector.extract_strided_slice %12 {offsets = [0, 1], sizes = [8, 1], strides = [1, 1]} : vector<8x2xf32> to vector<8x1xf32>
    %19 = arith.mulf %4, %17 : vector<8x1xf32>
    %20 = arith.subf %18, %19 : vector<8x1xf32>
    %21 = vector.broadcast %17 : vector<8x1xf32> to vector<8x16xf32>
    %22 = arith.mulf %0, %21 : vector<8x16xf32>
    %23 = vector.broadcast %20 : vector<8x1xf32> to vector<8x16xf32>
    %24 = arith.addf %22, %23 : vector<8x16xf32>
    %c0_7 = arith.constant 0 : index
    %c0_8 = arith.constant 0 : index
    %25 = vector.load %arg3[%c0_7, %c0_8] : memref<8x16xf32, #tpu.memory_space<vmem>>, vector<8x16xf32>
    tpu.vector_store %arg3[%c0_7, %c0_8], %24 {strides = array<i32>} : memref<8x16xf32, #tpu.memory_space<vmem>>, vector<8x16xf32>,
    return
  }
  func.func @transform_0(%arg0: i32) -> (i32, i32) {
    %c0_i32 = arith.constant 0 : i32
    %c0_i32_0 = arith.constant 0 : i32
    return %arg0, %c0_i32 : i32, i32
  }
  func.func @transform_1(%arg0: i32) -> (i32, i32) {
    %c0_i32 = arith.constant 0 : i32
    %c0_i32_0 = arith.constant 0 : i32
    return %arg0, %c0_i32 : i32, i32
  }
  func.func @transform_2(%arg0: i32) -> (i32, i32) {
    %c0_i32 = arith.constant 0 : i32
    %c0_i32_0 = arith.constant 0 : i32
    return %arg0, %c0_i32 : i32, i32
  }
}

</mosaic_0001>

<bundles_post_ra>
// kernel: tpu_custom_call.1
= control target key start
LH: loop header
LB: loop body
LE: loop exit
PB: predicated region body
PF: predicated region fallthrough
CT: control target
= control target key end

     0   :  { %vm13_vm0 = vcmask 130048   ;;  %s133_s0 = inlined_call_operand.vmem [shape: f32[8,16], index: 0, kind: input, shape index: {}]   ;;  %s134_s1 = inlined_call_operand.vmem [shape: f32[8,2], index: 1, kind: input, shape index: {}]   ;;  %s135_s2 = inlined_call_operand.hbm [shape: f32[8,16], index: 2, kind: output, shape index: {}]  }
   0x1   :  { %v12_v0 = vld [vmem:[%s133_s0] sm:$0xff] }
   0x2   :  { %7 = vsyncpa [#allocation3], 0  ;;  %v14_v1 = vsel %vm13_vm0, %v12_v0, 0.0  ;;  %v93_v7 = vmov 0   ;;  %v94_v11 = vmov 1   ;;  %v24_v12 = vld [vmem:[%s134_s1] sm:$0xff] }
   0x3   :  { %15 = vadd.xlane.f32.xlu0 %v14_v1  ;;  %65 = vset.pattern.permute.xlu1 %v93_v7  ;;  %s95_s12 = smov 1   ;;  %s96_s13 = smov [#allocation2]  }
   0x4   :  { %66 = vset.pattern.permute.xlu0 %v94_v11  ;;  %s53_s14 = sshll.u32 %s96_s13, 4  ;;  %s54_s14 = int_to_ptr.vmem [resolvable:$true] %s53_s14 }
   0x5   :  { %s69_s15 = scalar_lea.vmem %s54_s14, 128  ;;  %p74_p1 = scmp.lt.s32.totalorder %s54_s14, %s54_s14 }
   0x6   :  { %p70_p0 = scmp.ne.s32.totalorder %s54_s14, %s69_s15  ;;  %p75_p2 = scmp.lt.s32.totalorder %s69_s15, %s69_s15 }
   0x8   :  { %p76_p3 = por %p75_p2, %p74_p1 }
   0xa   :  { %p77_p4 = pnand %p76_p3, %p70_p0 }
  0x90   :  { %v16_v2 = vpop.xlane.xlu0 %15 }
  0x91   :  { %v17_v3 = vmul.f32 0.0625, %v16_v2 }
  0x93   :  { %v18_v4 = vsub.f32 %v12_v0, %v17_v3 }
  0x95   :  { %v19_v5 = vmul.f32 %v18_v4, %v18_v4 }
  0x97   :  { %v20_v6 = vsel %vm13_vm0, %v19_v5, 0.0 }
  0x98   :  { %21 = vadd.xlane.f32.xlu0 %v20_v6 }
 0x125   :  { %v22_v8 = vpop.xlane.xlu0 %21 }
 0x126   :  { %v23_v9 = vmul.f32 0.0625, %v22_v8 }
 0x128   :  { %v25_v10 = vadd.f32 1e-05, %v23_v9 }
 0x12a   :  { %67 = vrsqrt.f32 %v25_v10 }
 0x134   :  { %v68_v13 = vpop.eup %67 }
 0x135   :  { %v27_v14 = vmul.f32 %v68_v13, %v24_v12 }
 0x137   :  { %v28_v15 = vmul.f32 %v27_v14, %v17_v3 }
 0x139   :  { %30 = vrot.lane.b32.xlu1 %v28_v15, %s95_s12 }
 0x13d   :  { %36 = vperm.xlu1 %65, %v27_v14  }
 0x1ab   :  { %v31_v16 = vpop.permute.xlu1 %30 }
 0x1ac   :  { %v33_v17 = vsub.f32 %v24_v12, %v31_v16 }
 0x1ae   :  { %42 = vperm.xlu0 %66, %v33_v17  }
 0x1bc   :  { %v37_v18 = vpop.permute.xlu1 %36 }
 0x1bd   :  { %v39_v19 = vmul.f32 %v37_v18, %v12_v0 }
 0x22d   :  { %v43_v20 = vpop.permute.xlu0 %42 }
 0x22e   :  { %v45_v21 = vadd.f32 %v43_v20, %v39_v19 }
 0x230   :  { %46 = vst.msk [vmem:[#allocation2] sm:$0xff] %vm13_vm0, %v45_v21 }
 0x231   :  { %80 = shalt.err (!%p77_p4)
}
 0x232   :  { %s81_s17 = scalar_lea.hbm %s135_s2, 128 }
 0x233   :  { %p82_p5 = scmp.ne.s32.totalorder %s135_s2, %s81_s17  ;;  %p85_p6 = scmp.lt.u32.totalorder %s81_s17, %s135_s2 }
 0x235   :  { %p87_p7 = pnand %p85_p6, %p82_p5 }
 0x237   :  { %90 = shalt.err (!%p87_p7)
}
 0x238   :  { %56 = dma.vmem_to_hbm [thread:$0]  %s54_s14, 128, %s135_s2, [#allocation3]  }
 0x239   :  { %91 = dma.done.wait [#allocation3], 128  }
 0x23a   :  { %92 = vsyncadd [#allocation3], 4294967168 }
 0x23b   :  { %60 = vsyncpa [#allocation3], 1 }

</bundles_post_ra>
